<compile_context>
chip_gen: v6e
topology: v6e:2x2x1
jax: 0.10.0
libtpu: 0.0.40
codegen_flags: <defaults>
</compile_context>

<pallas_src>
import functools
import math

import jax
import jax.numpy as jnp
from jax import lax
from jax.experimental import pallas as pl
from jax.experimental.pallas import tpu as pltpu


def _round_up(x, m):
    return (x + m - 1) // m * m


def _chip_defaults():
    """Per-TPU-generation (token-tile, vmem_limit) defaults."""
    try:
        kind = jax.devices()[0].device_kind.lower()
    except Exception:
        kind = ""
    if "v5 lite" in kind or "v5e" in kind or "v5lite" in kind:
        # v5e: MXU-bound already around tm~256 (needs tm >~ 240); bigger tiles
        # only add VMEM pressure / pipeline latency.
        return 256, 64 * 1024 * 1024
    if "v6" in kind:
        # v6e: needs tm >~ 670 to be MXU-bound on the W2 stream; 128 MiB VMEM.
        return 1024, 100 * 1024 * 1024
    if "7" in kind:
        # v7x: needs tm >~ 620 but only 64 MiB physical VMEM per TensorCore —
        # keep the scoped limit at ~56 MiB for Mosaic scratch headroom.
        return 768, 56 * 1024 * 1024
    return 512, 64 * 1024 * 1024


# --------------------------- kernel A: dense + GELU + LN ---------------------


def _dense_gelu_ln_kernel(x_ref, w1_ref, b1_ref, g_ref, bt_ref, y_ref, acc_ref,
                          *, eps):
    # x_ref:   (tma, tk) bf16 token/K tile
    # w1_ref:  (tk, H)   bf16 dense-weight K slice (streamed, never resident)
    # b1/g/bt: (1, H)    f32  dense bias / LN gamma / LN beta
    # y_ref:   (tma, H)  bf16 output (post-LayerNorm activation)
    # acc_ref: (tma, H)  f32  VMEM accumulator
    k = pl.program_id(1)

    @pl.when(k == 0)
    def _():
        acc_ref[...] = jnp.zeros_like(acc_ref)

    acc_ref[...] += jnp.dot(x_ref[...], w1_ref[...],
                            preferred_element_type=jnp.float32)

    @pl.when(k == pl.num_programs(1) - 1)
    def _():
        h = acc_ref[...] + b1_ref[...]
        # exact (erf) GELU, matching torch.nn.GELU() default
        h = 0.5 * h * (1.0 + lax.erf(h * (1.0 / math.sqrt(2.0))))
        mean = jnp.mean(h, axis=-1, keepdims=True)
        c = h - mean
        var = jnp.mean(c * c, axis=-1, keepdims=True)
        y = c * lax.rsqrt(var + eps)
        y = y * g_ref[...] + bt_ref[...]
        y_ref[...] = y.astype(y_ref.dtype)


# --------------------------- kernel B: vocab projection ----------------------


def _vocab_proj_kernel(y_ref, w2_ref, b2_ref, out_ref):
    # y_ref:  (tmb, H) bf16;  w2_ref: (H, tn) bf16;  b2_ref: (1, tn) f32
    logits = jnp.dot(y_ref[...], w2_ref[...], preferred_element_type=jnp.float32)
    out_ref[...] = (logits + b2_ref[...]).astype(out_ref.dtype)


# --------------------------------- wrapper -----------------------------------


def lm_head(hidden_state, w_dense, b_dense, ln_gamma, ln_beta, w_vocab, b_vocab,
            *, eps=1e-6, tma=256, tmb=None, tk=None, tn=512,
            out_dtype=jnp.float32, vmem_limit_bytes=None):
    B, S, H = hidden_state.shape
    V = w_vocab.shape[1]
    M = B * S

    chip_tmb, chip_vmem = _chip_defaults()
    if tmb is None:
        tmb = chip_tmb
    if vmem_limit_bytes is None:
        vmem_limit_bytes = chip_vmem

    # --- tile sizing (sublane/lane aligned; grids use cdiv and Pallas masks
    # the partial edge blocks, so there is NO call-path padding) -------------
    tma = min(tma, _round_up(M, 8))
    tmb = min(tmb, _round_up(M, 8))
    if tk is None:
        # K-tile for the dense matmul must divide H exactly (reduction dim).
        tk = next((t for t in (512, 256, 128) if H % t == 0), H)
    if V <= tn:
        tn = V                        # single full-width vocab block
    else:
        tn = _round_up(tn, 128)       # lane-aligned vocab tile

    # --- operand preparation (bf16 matmul operands, f32 params) -------------
    x2d = hidden_state.reshape(M, H).astype(jnp.bfloat16)
    w1 = w_dense.astype(jnp.bfloat16)                     # [H, H]
    w2 = w_vocab.astype(jnp.bfloat16)                     # [H, V]  (no padding)
    b1 = b_dense.astype(jnp.float32).reshape(1, H)
    g = ln_gamma.astype(jnp.float32).reshape(1, H)
    bt = ln_beta.astype(jnp.float32).reshape(1, H)
    b2 = b_vocab.astype(jnp.float32).reshape(1, V)

    single = pl.Buffered(1)   # single-buffer (near-)grid-invariant operands

    # ---- kernel A: dense + GELU + LayerNorm -> y [M, H] bf16 ---------------
    grid_a = (pl.cdiv(M, tma), pl.cdiv(H, tk))
    cost_a = pl.CostEstimate(
        flops=int(2 * M * H * H),
        transcendentals=int(M * H),
        bytes_accessed=int(M * H * 2 + H * H * 2 + M * H * 2 + 3 * H * 4),
    )
    y = pl.pallas_call(
        functools.partial(_dense_gelu_ln_kernel, eps=eps),
        out_shape=jax.ShapeDtypeStruct((M, H), jnp.bfloat16),
        grid_spec=pltpu.PrefetchScalarGridSpec(
            num_scalar_prefetch=0,
            grid=grid_a,
            in_specs=[
                pl.BlockSpec((tma, tk), lambda i, k: (i, k)),           # x
                pl.BlockSpec((tk, H), lambda i, k: (k, 0)),             # W1 slice
                pl.BlockSpec((1, H), lambda i, k: (0, 0), pipeline_mode=single),
                pl.BlockSpec((1, H), lambda i, k: (0, 0), pipeline_mode=single),
                pl.BlockSpec((1, H), lambda i, k: (0, 0), pipeline_mode=single),
            ],
            out_specs=pl.BlockSpec((tma, H), lambda i, k: (i, 0)),
            scratch_shapes=[pltpu.VMEM((tma, H), jnp.float32)],
        ),
        compiler_params=pltpu.CompilerParams(
            dimension_semantics=("parallel", "arbitrary"),
            vmem_limit_bytes=vmem_limit_bytes,
        ),
        cost_estimate=cost_a,
    )(x2d, w1, b1, g, bt)

    # ---- kernel B: vocab projection y @ W2 + b2 -> logits [M, V] -----------
    grid_b = (pl.cdiv(M, tmb), pl.cdiv(V, tn))
    out_bytes = jnp.dtype(out_dtype).itemsize
    cost_b = pl.CostEstimate(
        flops=int(2 * M * H * V),
        transcendentals=0,
        bytes_accessed=int(M * H * 2 + H * V * 2 + V * 4 + M * V * out_bytes),
    )
    out2d = pl.pallas_call(
        _vocab_proj_kernel,
        out_shape=jax.ShapeDtypeStruct((M, V), out_dtype),
        grid_spec=pltpu.PrefetchScalarGridSpec(
            num_scalar_prefetch=0,
            grid=grid_b,
            in_specs=[
                # y changes only with the outer i axis -> single buffer.
                pl.BlockSpec((tmb, H), lambda i, j: (i, 0), pipeline_mode=single),
                pl.BlockSpec((H, tn), lambda i, j: (0, j)),             # W2 tile
                pl.BlockSpec((1, tn), lambda i, j: (0, j)),             # b2 tile
            ],
            out_specs=pl.BlockSpec((tmb, tn), lambda i, j: (i, j)),
        ),
        compiler_params=pltpu.CompilerParams(
            dimension_semantics=("parallel", "parallel"),
            vmem_limit_bytes=vmem_limit_bytes,
        ),
        cost_estimate=cost_b,
    )(y, w2, b2)

    return out2d.reshape(B, S, V)


# -------------------------------- reference ----------------------------------


def _reference(hidden_state, w_dense, b_dense, ln_gamma, ln_beta, w_vocab,
               b_vocab, eps=1e-6):
    # Mirrors the kernel's numerics: bf16 matmul operands, f32 accumulation,
    # f32 elementwise GELU / LayerNorm, bf16 post-LN activation.
    h = jnp.dot(hidden_state.astype(jnp.bfloat16), w_dense.astype(jnp.bfloat16),
                preferred_element_type=jnp.float32) + b_dense
    h = 0.5 * h * (1.0 + lax.erf(h / jnp.sqrt(2.0)))
    mean = h.mean(-1, keepdims=True)
    var = ((h - mean) ** 2).mean(-1, keepdims=True)
    y = (h - mean) * lax.rsqrt(var + eps) * ln_gamma + ln_beta
    logits = jnp.dot(y.astype(jnp.bfloat16), w_vocab.astype(jnp.bfloat16),
                     preferred_element_type=jnp.float32) + b_vocab
    return logits


if __name__ == "__main__":
    B, S, H, V = 2, 8, 32, 64   # small config: hidden_size=32, vocab_size=64

    key = jax.random.PRNGKey(0)
    k_x, k_w1, k_w2 = jax.random.split(key, 3)

    hidden_state = jax.random.normal(k_x, (B, S, H), dtype=jnp.float32)

    # Deterministic parameter init (PyTorch defaults in spirit: random linear
    # weights, zero biases, ones/zeros for LayerNorm; vocab bias == self.bias).
    w_dense = jax.random.normal(k_w1, (H, H), dtype=jnp.float32) * (1.0 / math.sqrt(H))
    b_dense = jnp.zeros((H,), dtype=jnp.float32)
    ln_gamma = jnp.ones((H,), dtype=jnp.float32)
    ln_beta = jnp.zeros((H,), dtype=jnp.float32)
    w_vocab = jax.random.normal(k_w2, (H, V), dtype=jnp.float32) * (1.0 / math.sqrt(H))
    b_vocab = jnp.zeros((V,), dtype=jnp.float32)

    out = lm_head(hidden_state, w_dense, b_dense, ln_gamma, ln_beta,
                  w_vocab, b_vocab)
    out = jax.block_until_ready(out)

    ref = _reference(hidden_state, w_dense, b_dense, ln_gamma, ln_beta,
                     w_vocab, b_vocab)
    assert out.shape == (B, S, V)
    assert jnp.allclose(out, ref, atol=1e-2, rtol=1e-2), "mismatch vs reference"

    print("KERNEL_OK")
</pallas_src>

<mosaic_0001>
module attributes {stable_mosaic.version = 11 : i64} {
  func.func @_dense_gelu_ln_kernel(%arg0: i32, %arg1: i32, %arg2: memref<16x32xbf16, #tpu.memory_space<vmem>>, %arg3: memref<32x32xbf16, #tpu.memory_space<vmem>>, %arg4: memref<1x32xf32, #tpu.memory_space<vmem>>, %arg5: memref<1x32xf32, #tpu.memory_space<vmem>>, %arg6: memref<1x32xf32, #tpu.memory_space<vmem>>, %arg7: memref<16x32xbf16, #tpu.memory_space<vmem>>, %arg8: memref<16x32xf32, #tpu.memory_space<vmem>>) attributes {dimension_semantics = [#tpu.dimension_semantics<parallel>, #tpu.dimension_semantics<arbitrary>], iteration_bounds = array<i64: 1, 1>, scalar_prefetch = 0 : i64, scratch_operands = 1 : i64, tpu.core_type = #tpu.core_type<tc>, window_params = [{transform_indices = @transform_0, window_bounds = array<i64: 16, 32>}, {transform_indices = @transform_1, window_bounds = array<i64: 32, 32>}, {pipeline_mode = #tpu.pipeline_mode<synchronous>, transform_indices = @transform_2, window_bounds = array<i64: 1, 32>}, {pipeline_mode = #tpu.pipeline_mode<synchronous>, transform_indices = @transform_3, window_bounds = array<i64: 1, 32>}, {pipeline_mode = #tpu.pipeline_mode<synchronous>, transform_indices = @transform_4, window_bounds = array<i64: 1, 32>}, {transform_indices = @transform_5, window_bounds = array<i64: 16, 32>}]} {
    %c0_i32 = arith.constant 0 : i32
    %0 = arith.cmpi eq, %arg1, %c0_i32 : i32
    %1 = arith.extui %0 : i1 to i32
    %c0_i32_0 = arith.constant 0 : i32
    %2 = arith.cmpi ne, %1, %c0_i32_0 : i32
    scf.if %2 {
      %cst_10 = arith.constant 0.000000e+00 : f32
      %12 = vector.broadcast %cst_10 : f32 to vector<16x32xf32>
      %c0_11 = arith.constant 0 : index
      %c0_12 = arith.constant 0 : index
      %13 = vector.load %arg8[%c0_11, %c0_12] : memref<16x32xf32, #tpu.memory_space<vmem>>, vector<16x32xf32>
      tpu.vector_store %arg8[%c0_11, %c0_12], %12 {strides = array<i32>} : memref<16x32xf32, #tpu.memory_space<vmem>>, vector<16x32xf32>,
    } else {
    }
    %c0 = arith.constant 0 : index
    %c0_1 = arith.constant 0 : index
    %3 = vector.load %arg8[%c0, %c0_1] : memref<16x32xf32, #tpu.memory_space<vmem>>, vector<16x32xf32>
    %c0_2 = arith.constant 0 : index
    %c0_3 = arith.constant 0 : index
    %4 = vector.load %arg2[%c0_2, %c0_3] : memref<16x32xbf16, #tpu.memory_space<vmem>>, vector<16x32xbf16>
    %c0_4 = arith.constant 0 : index
    %c0_5 = arith.constant 0 : index
    %5 = vector.load %arg3[%c0_4, %c0_5] : memref<32x32xbf16, #tpu.memory_space<vmem>>, vector<32x32xbf16>
    %cst = arith.constant dense<0.000000e+00> : vector<16x32xf32>
    %6 = tpu.matmul %4, %5, %cst {dimension_numbers = #tpu.dot_dimension_numbers<[1], [0], [0], [1], [0, 0, 1, 1], [], []>} : vector<16x32xbf16>, vector<32x32xbf16>, vector<16x32xf32> -> vector<16x32xf32>
    %7 = arith.addf %3, %6 : vector<16x32xf32>
    %c0_6 = arith.constant 0 : index
    %c0_7 = arith.constant 0 : index
    %8 = vector.load %arg8[%c0_6, %c0_7] : memref<16x32xf32, #tpu.memory_space<vmem>>, vector<16x32xf32>
    tpu.vector_store %arg8[%c0_6, %c0_7], %7 {strides = array<i32>} : memref<16x32xf32, #tpu.memory_space<vmem>>, vector<16x32xf32>,
    %c0_i32_8 = arith.constant 0 : i32
    %9 = arith.cmpi eq, %arg1, %c0_i32_8 : i32
    %10 = arith.extui %9 : i1 to i32
    %c0_i32_9 = arith.constant 0 : i32
    %11 = arith.cmpi ne, %10, %c0_i32_9 : i32
    scf.if %11 {
      %c0_10 = arith.constant 0 : index
      %c0_11 = arith.constant 0 : index
      %12 = vector.load %arg8[%c0_10, %c0_11] : memref<16x32xf32, #tpu.memory_space<vmem>>, vector<16x32xf32>
      %c0_12 = arith.constant 0 : index
      %c0_13 = arith.constant 0 : index
      %13 = vector.load %arg4[%c0_12, %c0_13] : memref<1x32xf32, #tpu.memory_space<vmem>>, vector<1x32xf32>
      %14 = vector.broadcast %13 : vector<1x32xf32> to vector<16x32xf32>
      %15 = arith.addf %12, %14 : vector<16x32xf32>
      %cst_14 = arith.constant 5.000000e-01 : f32
      %16 = vector.broadcast %cst_14 : f32 to vector<16x32xf32>
      %17 = arith.mulf %16, %15 : vector<16x32xf32>
      %cst_15 = arith.constant 0.707106769 : f32
      %18 = vector.broadcast %cst_15 : f32 to vector<16x32xf32>
      %19 = arith.mulf %15, %18 : vector<16x32xf32>
      %20 = math.erf %19 : vector<16x32xf32>
      %cst_16 = arith.constant 1.000000e+00 : f32
      %21 = vector.broadcast %cst_16 : f32 to vector<16x32xf32>
      %22 = arith.addf %21, %20 : vector<16x32xf32>
      %23 = arith.mulf %17, %22 : vector<16x32xf32>
      %cst_17 = arith.constant dense<0.000000e+00> : vector<16xf32>
      %24 = vector.multi_reduction <add>, %23, %cst_17 [1] : vector<16x32xf32> to vector<16xf32>
      %25 = vector.shape_cast %24 : vector<16xf32> to vector<16x1xf32>
      %cst_18 = arith.constant 3.200000e+01 : f32
      %26 = vector.broadcast %cst_18 : f32 to vector<16x1xf32>
      %27 = arith.divf %25, %26 : vector<16x1xf32>
      %28 = vector.broadcast %27 : vector<16x1xf32> to vector<16x32xf32>
      %29 = arith.subf %23, %28 : vector<16x32xf32>
      %30 = arith.mulf %29, %29 : vector<16x32xf32>
      %cst_19 = arith.constant dense<0.000000e+00> : vector<16xf32>
      %31 = vector.multi_reduction <add>, %30, %cst_19 [1] : vector<16x32xf32> to vector<16xf32>
      %32 = vector.shape_cast %31 : vector<16xf32> to vector<16x1xf32>
      %cst_20 = arith.constant 3.200000e+01 : f32
      %33 = vector.broadcast %cst_20 : f32 to vector<16x1xf32>
      %34 = arith.divf %32, %33 : vector<16x1xf32>
      %cst_21 = arith.constant 9.99999997E-7 : f32
      %35 = vector.broadcast %cst_21 : f32 to vector<16x1xf32>
      %36 = arith.addf %34, %35 : vector<16x1xf32>
      %37 = math.rsqrt %36 : vector<16x1xf32>
      %38 = vector.broadcast %37 : vector<16x1xf32> to vector<16x32xf32>
      %39 = arith.mulf %29, %38 : vector<16x32xf32>
      %c0_22 = arith.constant 0 : index
      %c0_23 = arith.constant 0 : index
      %40 = vector.load %arg5[%c0_22, %c0_23] : memref<1x32xf32, #tpu.memory_space<vmem>>, vector<1x32xf32>
      %41 = vector.broadcast %40 : vector<1x32xf32> to vector<16x32xf32>
      %42 = arith.mulf %39, %41 : vector<16x32xf32>
      %c0_24 = arith.constant 0 : index
      %c0_25 = arith.constant 0 : index
      %43 = vector.load %arg6[%c0_24, %c0_25] : memref<1x32xf32, #tpu.memory_space<vmem>>, vector<1x32xf32>
      %44 = vector.broadcast %43 : vector<1x32xf32> to vector<16x32xf32>
      %45 = arith.addf %42, %44 : vector<16x32xf32>
      %46 = arith.truncf %45 : vector<16x32xf32> to vector<16x32xbf16>
      %c0_26 = arith.constant 0 : index
      %c0_27 = arith.constant 0 : index
      %47 = vector.load %arg7[%c0_26, %c0_27] : memref<16x32xbf16, #tpu.memory_space<vmem>>, vector<16x32xbf16>
      tpu.vector_store %arg7[%c0_26, %c0_27], %46 {strides = array<i32>} : memref<16x32xbf16, #tpu.memory_space<vmem>>, vector<16x32xbf16>,
    } else {
    }
    return
  }
  func.func @transform_0(%arg0: i32, %arg1: i32) -> (i32, i32) {
    %c0_i32 = arith.constant 0 : i32
    return %arg0, %arg1 : i32, i32
  }
  func.func @transform_1(%arg0: i32, %arg1: i32) -> (i32, i32) {
    %c0_i32 = arith.constant 0 : i32
    %c0_i32_0 = arith.constant 0 : i32
    return %arg1, %c0_i32 : i32, i32
  }
  func.func @transform_2(%arg0: i32, %arg1: i32) -> (i32, i32) {
    %c0_i32 = arith.constant 0 : i32
    %c0_i32_0 = arith.constant 0 : i32
    %c0_i32_1 = arith.constant 0 : i32
    return %c0_i32, %c0_i32_0 : i32, i32
  }
  func.func @transform_3(%arg0: i32, %arg1: i32) -> (i32, i32) {
    %c0_i32 = arith.constant 0 : i32
    %c0_i32_0 = arith.constant 0 : i32
    %c0_i32_1 = arith.constant 0 : i32
    return %c0_i32, %c0_i32_0 : i32, i32
  }
  func.func @transform_4(%arg0: i32, %arg1: i32) -> (i32, i32) {
    %c0_i32 = arith.constant 0 : i32
    %c0_i32_0 = arith.constant 0 : i32
    %c0_i32_1 = arith.constant 0 : i32
    return %c0_i32, %c0_i32_0 : i32, i32
  }
  func.func @transform_5(%arg0: i32, %arg1: i32) -> (i32, i32) {
    %c0_i32 = arith.constant 0 : i32
    %c0_i32_0 = arith.constant 0 : i32
    return %arg0, %c0_i32 : i32, i32
  }
}

</mosaic_0001>

<bundles_post_ra>
// kernel: tpu_custom_call.1
= control target key start
LH: loop header
LB: loop body
LE: loop exit
PB: predicated region body
PF: predicated region fallthrough
CT: control target
= control target key end

     0   :  { %10 = vsyncpa [#allocation4], 0  ;;  %s408_s0 = inlined_call_operand.hbm [shape: bf16[16,32], index: 0, kind: input, shape index: {}]   ;;  %s409_s1 = inlined_call_operand.hbm [shape: bf16[32,32], index: 1, kind: input, shape index: {}]   ;;  %s410_s2 = inlined_call_operand.vmem [shape: f32[1,32], index: 2, kind: input, shape index: {}]   ;;  %s411_s3 = inlined_call_operand.vmem [shape: f32[1,32], index: 3, kind: input, shape index: {}]   ;;  %s412_s4 = inlined_call_operand.vmem [shape: f32[1,32], index: 4, kind: input, shape index: {}]   ;;  %s413_s5 = inlined_call_operand.hbm [shape: bf16[16,32], index: 5, kind: output, shape index: {}]  }
   0x1   :  { %11 = vsyncpa [#allocation7], 0 }
   0x2   :  { %12 = vsyncpa [#allocation5], 0  ;;  %s335_s18 = smov [#allocation3]  }
   0x3   :  { %s18_s19 = sshll.u32 %s335_s18, 4  ;;  %s19_s19 = int_to_ptr.vmem [resolvable:$true] %s18_s19 }
   0x4   :  { %s277_s20 = scalar_lea.vmem %s19_s19, 128  ;;  %p282_p1 = scmp.lt.s32.totalorder %s19_s19, %s19_s19 }
   0x5   :  { %p278_p0 = scmp.ne.s32.totalorder %s19_s19, %s277_s20  ;;  %p283_p2 = scmp.lt.s32.totalorder %s277_s20, %s277_s20 }
   0x7   :  { %p284_p3 = por %p283_p2, %p282_p1 }
   0x9   :  { %p285_p4 = pnand %p284_p3, %p278_p0 }
   0xb   :  { %288 = shalt.err (!%p285_p4)
}
   0xc   :  { %s336_s21 = smov 64   ;;  %s337_s22 = smov 4  }
   0xd   :  { %24 = dma.hbm_to_vmem [thread:$0]  %s408_s0, 128, %s19_s19, [#allocation4], %s336_s21, %s336_s21, %s337_s22  }
   0xe   :  { %s338_s25 = smov [#allocation6]  }
   0xf   :  { %s30_s26 = sshll.u32 %s338_s25, 4  ;;  %s31_s26 = int_to_ptr.vmem [resolvable:$true] %s30_s26 }
  0x10   :  { %s297_s27 = scalar_lea.vmem %s31_s26, 256  ;;  %p302_p6 = scmp.lt.s32.totalorder %s31_s26, %s31_s26 }
  0x11   :  { %p298_p5 = scmp.ne.s32.totalorder %s31_s26, %s297_s27  ;;  %p303_p7 = scmp.lt.s32.totalorder %s297_s27, %s297_s27 }
  0x13   :  { %p304_p8 = por %p303_p7, %p302_p6 }
  0x15   :  { %p305_p9 = pnand %p304_p8, %p298_p5 }
  0x17   :  { %308 = shalt.err (!%p305_p9)
}
  0x18   :  { %36 = dma.hbm_to_vmem [thread:$0]  %s409_s1, 256, %s31_s26, [#allocation7], %s336_s21, %s336_s21, %s337_s22  }
  0x19   :  { %329 = dma.done.wait [#allocation4], 128  }
  0x1a   :  { %330 = vsyncadd [#allocation4], 4294967168 }
  0x1b   :  { %331 = dma.done.wait [#allocation7], 256  }
  0x1c   :  { %332 = vsyncadd [#allocation7], 4294967040  ;;  %vm54_vm0 = vcmask 261120   ;;  %v339_v0 = vmov 0.0   ;;  %vm340_vm1 = vmmov 0   ;;  %v258_v1 = vld [vmem:[#allocation6 + $0x8] sm:$0xff]  }
  0x1d   :  { %55 = vst.msk [vmem:[#allocation2] sm:$0xff] %vm54_vm0, %v339_v0  ;;  %56 = vst.msk [vmem:[#allocation2 + $0x8] sm:$0xff] %vm54_vm0, %v339_v0  ;;  %243 = vmatprep.subr.bf16.mxu0 %v339_v0  ;;  %247 = vmatprep.mubr.msk.bf16.mxu0 %vm340_vm1, %v339_v0  ;;  %v259_v2 = vld [vmem:[#allocation6] sm:$0xff]   ;;  %v260_v3 = vld [vmem:[#allocation3] sm:$0xff]   ;;  %vm208_vm2 = vcmask 257024   ;;  %s341_s8 = smov [#allocation8]  }
  0x1e   :  { %244 = vmatpush3.bf16.msra.mxu0 %v258_v1  ;;  %v233_v12 = vld [vmem:[%s410_s2] ss:$0 sm:$0xff]  ;;  %s216_s9 = sshll.u32 %s341_s8, 4  ;;  %s217_s9 = int_to_ptr.vmem [resolvable:$true] %s216_s9 }
  0x1f   :  { %245 = vmatprep.subr.bf16.mxu0 %v339_v0  ;;  %v234_v46 = vld [vmem:[%s411_s3] ss:$0 sm:$0xff]  ;;  %s309_s3 = scalar_lea.vmem %s217_s9, 128  ;;  %p314_p11 = scmp.lt.s32.totalorder %s217_s9, %s217_s9 }
  0x20   :  { %v235_v48 = vld [vmem:[%s412_s4] ss:$0 sm:$0xff]  ;;  %p310_p10 = scmp.ne.s32.totalorder %s217_s9, %s309_s3  ;;  %p315_p12 = scmp.lt.s32.totalorder %s309_s3, %s309_s3 }
  0x22   :  { %246 = vmatpush3.bf16.msra.mxu0 %v259_v2  ;;  %p316_p13 = por %p315_p12, %p314_p11 }
  0x24   :  { %v57_v4 = vld [vmem:[#allocation2] sm:$0xff]  ;;  %v58_v8 = vld [vmem:[#allocation2 + $0x8] sm:$0xff]  ;;  %p317_p0 = pnand %p316_p13, %p310_p10 }
  0x25   :  { %248 = vmatmul.mubr.msk.bf16.vlgmr.msra.gmra.mxu0 %vm54_vm0, %v260_v3 }
  0xe5   :  { %v120_v5 = vpop.f32.mrf.mxu0 }
  0xe6   :  { %v127_v6 = vadd.f32 %v120_v5, %v57_v4 }
  0xe7   :  { %v249_v7 = vpop.f32.mrf.mxu0 }
  0xe8   :  { %129 = vst.msk [vmem:[#allocation2] sm:$0xff] %vm54_vm0, %v127_v6 }
  0xe9   :  { %v123_v9 = vpop.f32.mrf.mxu0 }
  0xea   :  { %v128_v10 = vadd.f32 %v123_v9, %v58_v8 }
  0xeb   :  { %v250_v11 = vpop.f32.mrf.mxu0 }
  0xec   :  { %130 = vst.msk [vmem:[#allocation2 + $0x8] sm:$0xff] %vm54_vm0, %v128_v10 }
  0xef   :  { %v134_v13 = vld [vmem:[#allocation2] sm:$0xff] }
  0xf0   :  { %v143_v14 = vadd.f32 %v233_v12, %v134_v13 }
  0xf2   :  { %v147_v15 = vmul.f32 0.70710677, %v143_v14  ;;  %v145_v20 = vmul.f32 0.5, %v143_v14 }
  0xf3   :  { %v135_v16 = vld [vmem:[#allocation2 + $0x8] sm:$0xff] }
  0xf4   :  { %261 = verf.f32 %v147_v15  ;;  %v144_v17 = vadd.f32 %v233_v12, %v135_v16 }
  0xf6   :  { %v148_v18 = vmul.f32 0.70710677, %v144_v17  ;;  %v146_v25 = vmul.f32 0.5, %v144_v17 }
  0xf8   :  { %263 = verf.f32 %v148_v18 }
 0x101   :  { %v262_v19 = vpop.eup %261 }
 0x102   :  { %v151_v21 = vadd.f32 1.0, %v262_v19 }
 0x104   :  { %v153_v22 = vmul.f32 %v151_v21, %v145_v20 }
 0x105   :  { %v264_v23 = vpop.eup %263 }
 0x106   :  { %v155_v24 = vsel %vm54_vm0, %v153_v22, 0.0  ;;  %v152_v26 = vadd.f32 1.0, %v264_v23 }
 0x107   :  { %156 = vadd.xlane.f32.xlu0 %v155_v24 }
 0x108   :  { %v154_v27 = vmul.f32 %v152_v26, %v146_v25 }
 0x10a   :  { %v158_v28 = vsel %vm54_vm0, %v154_v27, 0.0 }
 0x10b   :  { %159 = vadd.xlane.f32.xlu0 %v158_v28 }
 0x190   :  { %v157_v29 = vpop.xlane.xlu0 %156 }
 0x191   :  { %v162_v30 = vmul.f32 0.03125, %v157_v29 }
 0x193   :  { %v164_v31 = vsub.f32 %v153_v22, %v162_v30 }
 0x194   :  { %v160_v32 = vpop.xlane.xlu0 %159 }
 0x195   :  { %v163_v33 = vmul.f32 0.03125, %v160_v32  ;;  %v166_v34 = vmul.f32 %v164_v31, %v164_v31 }
 0x197   :  { %v165_v35 = vsub.f32 %v154_v27, %v163_v33  ;;  %v168_v36 = vsel %vm54_vm0, %v166_v34, 0.0 }
 0x198   :  { %169 = vadd.xlane.f32.xlu1 %v168_v36 }
 0x199   :  { %v167_v37 = vmul.f32 %v165_v35, %v165_v35 }
 0x19b   :  { %v171_v38 = vsel %vm54_vm0, %v167_v37, 0.0 }
 0x19c   :  { %172 = vadd.xlane.f32.xlu1 %v171_v38 }
 0x221   :  { %v170_v39 = vpop.xlane.xlu1 %169 }
 0x222   :  { %v174_v40 = vmul.f32 0.03125, %v170_v39 }
 0x224   :  { %v176_v41 = vadd.f32 1e-06, %v174_v40 }
 0x225   :  { %v173_v42 = vpop.xlane.xlu1 %172 }
 0x226   :  { %265 = vrsqrt.f32 %v176_v41  ;;  %v175_v43 = vmul.f32 0.03125, %v173_v42 }
 0x228   :  { %v177_v44 = vadd.f32 1e-06, %v175_v43 }
 0x22a   :  { %267 = vrsqrt.f32 %v177_v44 }
 0x233   :  { %v266_v45 = vpop.eup %265 }
 0x234   :  { %v180_v47 = vmul.f32 %v266_v45, %v164_v31 }
 0x236   :  { %v189_v49 = vmul.f32 %v234_v46, %v180_v47 }
 0x237   :  { %v268_v50 = vpop.eup %267 }
 0x238   :  { %v181_v51 = vmul.f32 %v268_v50, %v165_v35  ;;  %v198_v52 = vadd.f32 %v235_v48, %v189_v49 }
 0x23a   :  { %v190_v53 = vmul.f32 %v234_v46, %v181_v51  ;;  %v238_v54 = vpack.c.bf16 %v198_v52, %v198_v52 }
 0x23c   :  { %v199_v55 = vadd.f32 %v235_v48, %v190_v53  ;;  %209 = vst.msk [vmem:[#allocation8] sm:$0xf] %vm208_vm2, %v238_v54 }
 0x23e   :  { %v239_v56 = vpack.c.bf16 %v199_v55, %v199_v55 }
 0x240   :  { %210 = vst.msk [vmem:[#allocation8 + $0x4] sm:$0xf] %vm208_vm2, %v239_v56 }
 0x241   :  { %320 = shalt.err (!%p317_p0)
}
 0x242   :  { %222 = dma.vmem_to_hbm [thread:$0]  %s217_s9, 128, %s413_s5, [#allocation5], %s336_s21, %s336_s21, %s337_s22  }
 0x243   :  { %333 = dma.done.wait [#allocation5], 128  }
 0x244   :  { %334 = vsyncadd [#allocation5], 4294967168 }
 0x245   :  { %226 = vsyncpa [#allocation4], 1 }
 0x246   :  { %227 = vsyncpa [#allocation7], 1 }
 0x247   :  { %228 = vsyncpa [#allocation5], 1 }

</bundles_post_ra>
